<compile_context>
chip_gen: v7x
topology: tpu7x:2x2x1
jax: 0.10.0
libtpu: 0.0.40
codegen_flags: <defaults>
</compile_context>

<pallas_src>
import numpy as np
import jax
import jax.numpy as jnp
from jax.experimental import pallas as pl
from jax.experimental.pallas import tpu as pltpu


_LUMA = (0.2989, 0.587, 0.114)


def _make_saturation_kernel(rate):
    """Build a kernel specialized on the (host-known) saturation rate."""
    rate = float(rate)
    a = rate
    bw = tuple(float((1.0 - rate) * w) for w in _LUMA)
    # Folds the (img+1)/2 and out*2-1 remaps (sum(_LUMA) != 1 exactly).
    off = float((1.0 - rate) * (sum(_LUMA) - 1.0))

    def kernel(x_ref, o_ref):
        # x_ref / o_ref block: (1, 3, rows_tile, lanes)
        ch = x_ref[0]                      # (3, rows_tile, lanes)
        rc, gc, bc = ch[0], ch[1], ch[2]
        blend = bw[0] * rc + bw[1] * gc + bw[2] * bc + off
        o_ref[0, 0] = jnp.clip(a * rc + blend, -1.0, 1.0)
        o_ref[0, 1] = jnp.clip(a * gc + blend, -1.0, 1.0)
        o_ref[0, 2] = jnp.clip(a * bc + blend, -1.0, 1.0)

    return kernel


def _pick_tile(extent, lane_width, itemsize, budget_bytes=2 * 1024 * 1024):
    """Largest power-of-two (multiple-of-8) row tile that divides `extent` and
    keeps one (3, tile, lane_width) block within the VMEM budget."""
    max_rows = max(8, budget_bytes // (3 * lane_width * itemsize))
    for t in (512, 256, 128, 64, 32, 16, 8):
        if t <= max_rows and extent % t == 0:
            return t
    # TODO(synk): extents that are not multiples of 8 fall back to a single
    # full-extent block; fine for the image sizes this noise layer sees.
    return extent


def random_saturation(image_and_cover, rate):
    """Pallas port of RandomSaturation.forward for a fixed (host-chosen) rate."""
    image, _cover = image_and_cover            # cover image is unused, as in the module
    B, C, H, W = image.shape
    assert C == 3, "RandomSaturation expects RGB input (NCHW, C=3)"
    S = H * W
    itemsize = jnp.dtype(image.dtype).itemsize

    if S % 128 == 0:
        # Lane-dense layout: flatten H*W and view as (rows, 128).  Reshape of
        # contiguous trailing dims -> no data movement; stores are full-lane vst.
        rows, lanes = S // 128, 128
        arr = image.reshape(B, C, rows, lanes)
    else:
        # Fallback: H on sublanes, full W on lanes (still no wrapper-side copy).
        rows, lanes = H, W
        arr = image

    tile = _pick_tile(rows, lanes, itemsize)
    grid = (B, rows // tile)
    block = (1, C, tile, lanes)
    spec = pl.BlockSpec(block, lambda b, s: (b, 0, s, 0))

    out = pl.pallas_call(
        _make_saturation_kernel(rate),
        out_shape=jax.ShapeDtypeStruct((B, C, rows, lanes), image.dtype),
        grid=grid,
        in_specs=[spec],
        out_specs=spec,
        compiler_params=pltpu.CompilerParams(
            dimension_semantics=("parallel", "parallel")),
    )(arr)

    return out.reshape(B, C, H, W)


def _reference(image, rate):
    x = (image + 1.0) * 0.5
    gray = (0.2989 * x[:, 0:1] + 0.587 * x[:, 1:2] + 0.114 * x[:, 2:3])
    out = jnp.clip(rate * x + (1.0 - rate) * gray, 0.0, 1.0)
    return out * 2.0 - 1.0


if __name__ == "__main__":
    key = jax.random.PRNGKey(0)
    k_img, k_cov, k_img2 = jax.random.split(key, 3)

    # Mimic the module's `rate = random.uniform(min_r, max_r)` deterministically.
    rng = np.random.RandomState(0)
    rate = float(rng.uniform(0.5, 1.5))

    B, C, H, W = 2, 3, 16, 16   # RGB image in NCHW, values in [-1, 1]
    image = jax.random.uniform(k_img, (B, C, H, W), jnp.float32,
                               minval=-1.0, maxval=1.0)
    cover = jax.random.uniform(k_cov, (B, C, H, W), jnp.float32,
                               minval=-1.0, maxval=1.0)

    out = jax.block_until_ready(random_saturation((image, cover), rate))
    np.testing.assert_allclose(np.asarray(out), np.asarray(_reference(image, rate)),
                               rtol=1e-5, atol=1e-5)

    # Also exercise the non-lane-dense fallback path (H*W not a multiple of 128).
    image2 = jax.random.uniform(k_img2, (2, 3, 12, 12), jnp.float32,
                                minval=-1.0, maxval=1.0)
    out2 = jax.block_until_ready(
        random_saturation((image2, cover[:, :, :12, :12]), rate))
    np.testing.assert_allclose(np.asarray(out2), np.asarray(_reference(image2, rate)),
                               rtol=1e-5, atol=1e-5)

    print("KERNEL_OK")
</pallas_src>

<mosaic_0001>
module attributes {stable_mosaic.version = 11 : i64} {
  func.func @kernel(%arg0: i32, %arg1: i32, %arg2: memref<1x3x2x128xf32, #tpu.memory_space<vmem>>, %arg3: memref<1x3x2x128xf32, #tpu.memory_space<vmem>>) attributes {dimension_semantics = [#tpu.dimension_semantics<parallel>, #tpu.dimension_semantics<parallel>], iteration_bounds = array<i64: 2, 1>, scalar_prefetch = 0 : i64, scratch_operands = 0 : i64, tpu.core_type = #tpu.core_type<tc>, window_params = [{transform_indices = @transform_0, window_bounds = array<i64: 1, 3, 2, 128>}, {transform_indices = @transform_1, window_bounds = array<i64: 1, 3, 2, 128>}]} {
    %c0 = arith.constant 0 : index
    %c0_0 = arith.constant 0 : index
    %c0_1 = arith.constant 0 : index
    %c0_2 = arith.constant 0 : index
    %0 = vector.load %arg2[%c0, %c0_0, %c0_1, %c0_2] : memref<1x3x2x128xf32, #tpu.memory_space<vmem>>, vector<1x3x2x128xf32>
    %1 = vector.shape_cast %0 : vector<1x3x2x128xf32> to vector<3x2x128xf32>
    %2 = vector.extract_strided_slice %1 {offsets = [0, 0, 0], sizes = [1, 2, 128], strides = [1, 1, 1]} : vector<3x2x128xf32> to vector<1x2x128xf32>
    %3 = vector.shape_cast %2 : vector<1x2x128xf32> to vector<2x128xf32>
    %4 = vector.extract_strided_slice %1 {offsets = [1, 0, 0], sizes = [1, 2, 128], strides = [1, 1, 1]} : vector<3x2x128xf32> to vector<1x2x128xf32>
    %5 = vector.shape_cast %4 : vector<1x2x128xf32> to vector<2x128xf32>
    %6 = vector.extract_strided_slice %1 {offsets = [2, 0, 0], sizes = [1, 2, 128], strides = [1, 1, 1]} : vector<3x2x128xf32> to vector<1x2x128xf32>
    %7 = vector.shape_cast %6 : vector<1x2x128xf32> to vector<2x128xf32>
    %cst = arith.constant -0.0145903565 : f32
    %8 = vector.broadcast %cst : f32 to vector<2x128xf32>
    %9 = arith.mulf %8, %3 : vector<2x128xf32>
    %cst_3 = arith.constant -0.0286535267 : f32
    %10 = vector.broadcast %cst_3 : f32 to vector<2x128xf32>
    %11 = arith.mulf %10, %5 : vector<2x128xf32>
    %12 = arith.addf %9, %11 : vector<2x128xf32>
    %cst_4 = arith.constant -0.00556473946 : f32
    %13 = vector.broadcast %cst_4 : f32 to vector<2x128xf32>
    %14 = arith.mulf %13, %7 : vector<2x128xf32>
    %15 = arith.addf %12, %14 : vector<2x128xf32>
    %cst_5 = arith.constant 4.88135038E-6 : f32
    %16 = vector.broadcast %cst_5 : f32 to vector<2x128xf32>
    %17 = arith.addf %15, %16 : vector<2x128xf32>
    %cst_6 = arith.constant 1.04881346 : f32
    %18 = vector.broadcast %cst_6 : f32 to vector<2x128xf32>
    %19 = arith.mulf %18, %3 : vector<2x128xf32>
    %20 = arith.addf %19, %17 : vector<2x128xf32>
    %cst_7 = arith.constant -1.000000e+00 : f32
    %cst_8 = arith.constant 1.000000e+00 : f32
    %21 = vector.broadcast %cst_7 : f32 to vector<2x128xf32>
    %22 = arith.maximumf %21, %20 : vector<2x128xf32>
    %23 = vector.broadcast %cst_8 : f32 to vector<2x128xf32>
    %24 = arith.minimumf %23, %22 : vector<2x128xf32>
    %c0_9 = arith.constant 0 : index
    %c0_10 = arith.constant 0 : index
    %c0_11 = arith.constant 0 : index
    %c0_12 = arith.constant 0 : index
    %25 = vector.load %arg3[%c0_9, %c0_10, %c0_11, %c0_12] : memref<1x3x2x128xf32, #tpu.memory_space<vmem>>, vector<1x1x2x128xf32>
    %26 = vector.shape_cast %25 : vector<1x1x2x128xf32> to vector<2x128xf32>
    %27 = vector.shape_cast %24 : vector<2x128xf32> to vector<1x1x2x128xf32>
    tpu.vector_store %arg3[%c0_9, %c0_10, %c0_11, %c0_12], %27 {strides = array<i32>} : memref<1x3x2x128xf32, #tpu.memory_space<vmem>>, vector<1x1x2x128xf32>,
    %cst_13 = arith.constant 1.04881346 : f32
    %28 = vector.broadcast %cst_13 : f32 to vector<2x128xf32>
    %29 = arith.mulf %28, %5 : vector<2x128xf32>
    %30 = arith.addf %29, %17 : vector<2x128xf32>
    %cst_14 = arith.constant -1.000000e+00 : f32
    %cst_15 = arith.constant 1.000000e+00 : f32
    %31 = vector.broadcast %cst_14 : f32 to vector<2x128xf32>
    %32 = arith.maximumf %31, %30 : vector<2x128xf32>
    %33 = vector.broadcast %cst_15 : f32 to vector<2x128xf32>
    %34 = arith.minimumf %33, %32 : vector<2x128xf32>
    %c0_16 = arith.constant 0 : index
    %c1 = arith.constant 1 : index
    %c0_17 = arith.constant 0 : index
    %c0_18 = arith.constant 0 : index
    %35 = vector.load %arg3[%c0_16, %c1, %c0_17, %c0_18] : memref<1x3x2x128xf32, #tpu.memory_space<vmem>>, vector<1x1x2x128xf32>
    %36 = vector.shape_cast %35 : vector<1x1x2x128xf32> to vector<2x128xf32>
    %37 = vector.shape_cast %34 : vector<2x128xf32> to vector<1x1x2x128xf32>
    tpu.vector_store %arg3[%c0_16, %c1, %c0_17, %c0_18], %37 {strides = array<i32>} : memref<1x3x2x128xf32, #tpu.memory_space<vmem>>, vector<1x1x2x128xf32>,
    %cst_19 = arith.constant 1.04881346 : f32
    %38 = vector.broadcast %cst_19 : f32 to vector<2x128xf32>
    %39 = arith.mulf %38, %7 : vector<2x128xf32>
    %40 = arith.addf %39, %17 : vector<2x128xf32>
    %cst_20 = arith.constant -1.000000e+00 : f32
    %cst_21 = arith.constant 1.000000e+00 : f32
    %41 = vector.broadcast %cst_20 : f32 to vector<2x128xf32>
    %42 = arith.maximumf %41, %40 : vector<2x128xf32>
    %43 = vector.broadcast %cst_21 : f32 to vector<2x128xf32>
    %44 = arith.minimumf %43, %42 : vector<2x128xf32>
    %c0_22 = arith.constant 0 : index
    %c2 = arith.constant 2 : index
    %c0_23 = arith.constant 0 : index
    %c0_24 = arith.constant 0 : index
    %45 = vector.load %arg3[%c0_22, %c2, %c0_23, %c0_24] : memref<1x3x2x128xf32, #tpu.memory_space<vmem>>, vector<1x1x2x128xf32>
    %46 = vector.shape_cast %45 : vector<1x1x2x128xf32> to vector<2x128xf32>
    %47 = vector.shape_cast %44 : vector<2x128xf32> to vector<1x1x2x128xf32>
    tpu.vector_store %arg3[%c0_22, %c2, %c0_23, %c0_24], %47 {strides = array<i32>} : memref<1x3x2x128xf32, #tpu.memory_space<vmem>>, vector<1x1x2x128xf32>,
    return
  }
  func.func @transform_0(%arg0: i32, %arg1: i32) -> (i32, i32, i32, i32) {
    %c0_i32 = arith.constant 0 : i32
    %c0_i32_0 = arith.constant 0 : i32
    %c0_i32_1 = arith.constant 0 : i32
    return %arg0, %c0_i32, %arg1, %c0_i32_0 : i32, i32, i32, i32
  }
  func.func @transform_1(%arg0: i32, %arg1: i32) -> (i32, i32, i32, i32) {
    %c0_i32 = arith.constant 0 : i32
    %c0_i32_0 = arith.constant 0 : i32
    %c0_i32_1 = arith.constant 0 : i32
    return %arg0, %c0_i32, %arg1, %c0_i32_0 : i32, i32, i32, i32
  }
}

</mosaic_0001>

<bundles_post_ra>
// kernel: tpu_custom_call.1
= control target key start
LH: loop header
LB: loop body
LE: loop exit
PB: predicated region body
PF: predicated region fallthrough
CT: control target
= control target key end

     0   :  { %6 = vsyncpa [#allocation3], 0  ;;  %s667_s0 = inlined_call_operand.hbm [shape: f32[2,3,2,128], index: 0, kind: input, shape index: {}]   ;;  %s668_s1 = inlined_call_operand.hbm [shape: f32[2,3,2,128], index: 1, kind: output, shape index: {}]  }
   0x1   :  { %8 = vsyncpa [#allocation3 + $0x1], 0 }
   0x2   :  { %9 = vsyncpa [#allocation4], 0 }
   0x3   :  { %11 = vsyncpa [#allocation4 + $0x1], 0  ;;  %s492_s6 = smov 0   ;;  %s494_s7 = smov 0  }
   0x4   :  { %s496_s8 = smov 0   ;;  %s498_s9 = smov 0  }
   0x5   :  { %s500_s10 = smov 0   ;;  %s502_s11 = smov 0  }
   0x6 LB: > { %s278_s12 = sadd.s32 4294967295, %s474_s11   ;;  %s279_s13 = sadd.s32 4294967294, %s474_s11   ;;  %s474_s11 = sphi %s502_s11, %s17_s11   ;;  %s470_s10 = sphi %s500_s10, %s683_s10   ;;  %s466_s9 = sphi %s498_s9, %s682_s9   ;;  %s462_s8 = sphi %s496_s8, %s681_s8   ;;  %s458_s7 = sphi %s494_s7, %s680_s7   ;;  %s454_s6 = sphi %s492_s6, %s679_s6  }
   0x7   : > { %s29_s14 = sadd.s32 1, %s470_s10  ;;  %s38_s15 = sadd.s32 1, %s462_s8 }
   0x8   : > { %p31_p0 = scmp.ge.s32.totalorder %s29_s14, 2  ;;  %p45_p1 = scmp.ne.s32.totalorder %s462_s8, %s458_s7 }
   0x9   : > { %p46_p2 = scmp.eq.s32.totalorder %s474_s11, 0  ;;  %p51_p3 = scmp.ne.s32.totalorder %s458_s7, %s454_s6 }
   0xa   : > { %s685_s14 = smov (%p31_p0, %s29_s14), 0  ;;  %p52_p5 = scmp.eq.s32.totalorder %s278_s12, 0 }
   0xb   : > { %p533_p4 = por %p46_p2, %p45_p1  ;;  %s33_s17 = ssub.s32 %s470_s10, %s685_s14 }
   0xc   : > { %p77_p6 = scmp.eq.s32.totalorder %s278_s12, 1  ;;  %p36_p7 = scmp.eq.s32.totalorder %s33_s17, 0 }
   0xd   : > { %p539_p8 = por %p52_p5, %p51_p3  ;;  %p83_p10 = scmp.eq.s32.totalorder %s279_s13, 1 }
   0xe   : > { %p543_p9 = por %p77_p6, %p45_p1  ;;  %p308_p13 = scmp.lt.s32.totalorder %s474_s11, 2 }
   0xf   : > { %s548_s20 = scalar_select %p36_p7, %s462_s8, %s38_s15  }
  0x10   : > { %s672_s19 = scalar_select %p543_p9, 1, 0 }
  0x11   : > { %p550_p11 = por %p83_p10, %p51_p3  ;;  %s103_s22 = sand.u32 1, %s462_s8  }
  0x12   : > { %s292_s23 = smul.u32 6, %s103_s22  ;;  %p560_p0 = pnand %p308_p13, %p533_p4 }
  0x13   : > { %s673_s21 = scalar_select %p550_p11, 1, 0 }
  0x14   : > { %s293_s24 = smul.u32 96, %s470_s10  ;;  %s107_s29 = scalar_lea.vmem [#allocation2], %s292_s23 }
  0x15   : > { %s115_s30 = sshll.u32 %s107_s29, 4  ;;  %s572_s2 = scalar_lea.sflag [#allocation3], %s103_s22  ;;  %s569_s30 = int_to_ptr.vmem [resolvable:$true] %s115_s30 }
  0x16   : > { %s567_s28 = scalar_lea.hbm %s667_s0, %s293_s24  ;;  %p364_p3 = pneg %p560_p0 }
  0x17   : > { %s362_s3 = scalar_lea.hbm %s567_s28, 96  ;;  %s367_s12 = scalar_lea.hbm %s667_s0, 192 }
  0x18   : > { %p363_p2 = scmp.ne.s32.totalorder %s567_s28, %s362_s3  ;;  %p368_p6 = scmp.lt.u32.totalorder %s567_s28, %s667_s0 }
  0x19   : > { %p369_p7 = scmp.lt.u32.totalorder %s367_s12, %s362_s3  ;;  %p371_p13 = scmp.lt.u32.totalorder %s362_s3, %s567_s28 }
  0x1a   : > { %p365_p4 = pnand %p364_p3, %p363_p2 }
  0x1b   : > { %p370_p10 = por %p369_p7, %p368_p6 }
  0x1c   : > { %p366_p5 = pneg %p365_p4 }
  0x1d   : > { %p372_p12 = por %p371_p13, %p370_p10 }
  0x1f   : > { %p373_p1 = pnand %p372_p12, %p366_p5 }
  0x21   : > { %376 = shalt.err (!%p373_p1)
}
  0x22   : > { %s377_s16 = scalar_lea.vmem %s569_s30, 96  ;;  %s476_s17 = smov [#allocation2]  }
  0x23   : > { %p378_p2 = scmp.ne.s32.totalorder %s569_s30, %s377_s16  ;;  %s382_s22 = sshll.u32 %s476_s17, 4  ;;  %s383_s22 = int_to_ptr.vmem [resolvable:$false] %s382_s22 }
  0x24   : > { %s384_s23 = scalar_lea.vmem %s383_s22, 192  ;;  %p385_p9 = scmp.lt.s32.totalorder %s569_s30, %s383_s22 }
  0x25   : > { %p380_p4 = pnand %p378_p2, %p364_p3  ;;  %p386_p6 = scmp.lt.s32.totalorder %s384_s23, %s377_s16 }
  0x27   : > { %p381_p11 = pneg %p380_p4  ;;  %p387_p7 = por %p386_p6, %p385_p9 }
  0x29   : > { %p388_p10 = pnand %p387_p7, %p381_p11 }
  0x2b   : > { %391 = shalt.err (!%p388_p10)
}
  0x2c   : > { %s477_s24 = smov 32   ;;  %s478_s26 = smov 2  }
  0x2d   : > { %303 = dma.hbm_to_vmem [thread:$0]  (!%p560_p0), %s567_s28, 96, %s569_s30, %s572_s2, %s477_s24, %s477_s24, %s478_s26  }
  0x2e   : > { %p123_p12 = scmp.lt.s32.totalorder %s474_s11, 3  ;;  %p675_p1 = scmp.ge.s32.totalorder %s474_s11, 1 }
  0x30   : > { %p124_p3 = pnand %p675_p1, %p123_p12 }
  0x31   : > { %s604_s27 = sand.u32 (!%p124_p3), 1, %s458_s7  }
  0x32   : > { %127 = sbr.rel (%p124_p3) target bundleno = 87 (0x57), region = 24  ;;  %s130_s3 = scalar_lea.sflag (!%p124_p3), [#allocation3], %s604_s27 }
  0x33   : > { %s294_s29 = smul.u32 (!%p124_p3), 6, %s604_s27 }
  0x35   : > { %s133_s4 = scalar_lea.vmem (!%p124_p3), [#allocation2], %s294_s29 }
  0x39   : > { %445 = dma.done.wait (%p539_p8), %s130_s3, 96  }
  0x3a   : > { %447 = vsyncadd (%p539_p8), %s130_s3, 4294967200  ;;  %v152_v0 = vld [vmem:[%s133_s4] sm:$0x3]  ;;  %v153_v1 = vld [vmem:[%s133_s4 + $0x2] sm:$0x3]  ;;  %s151_s25 = scalar_lea.vmem [#allocation5], %s294_s29 }
  0x3b   : > { %v154_v2 = vld [vmem:[%s133_s4 + $0x4] sm:$0x3]  ;;  %v155_v3 = vmul.f32 -0.0145903565, %v152_v0  ;;  %v156_v4 = vmul.f32 -0.028653527, %v153_v1 }
  0x3c   : > { %v158_v5 = vmul.f32 -0.0055647395, %v154_v2  ;;  %v161_v8 = vmul.f32 1.0488135, %v152_v0  ;;  %v166_v9 = vmul.f32 1.0488135, %v153_v1 }
  0x3d   : > { %v157_v6 = vadd.f32 %v156_v4, %v155_v3  ;;  %v172_v10 = vmul.f32 1.0488135, %v154_v2  ;;  %s193_s28 = sshll.u32 %s151_s25, 4  ;;  %s295_s30 = smul.u32 96, %s466_s9  ;;  %s613_s28 = int_to_ptr.vmem [resolvable:$true] %s193_s28 }
  0x3e   : > { %s179_s9 = scalar_lea.sflag [#allocation4], %s604_s27  ;;  %s392_s12 = scalar_lea.vmem %s613_s28, 96 }
  0x3f   : > { %v159_v7 = vadd.f32 %v158_v5, %v157_v6  ;;  %s618_s5 = scalar_lea.hbm %s668_s1, %s295_s30  ;;  %p393_p8 = scmp.ne.s32.totalorder %s613_s28, %s392_s12 }
  0x40   : > { %p676_p9 = scmp.ne.s32.totalorder %s672_s19, 0  ;;  %s479_s13 = smov [#allocation5]  }
  0x41   : > { %v160_v11 = vadd.f32 4.8813504e-06, %v159_v7  ;;  %s396_s15 = sshll.u32 %s479_s13, 4  ;;  %s397_s15 = int_to_ptr.vmem [resolvable:$false] %s396_s15 }
  0x42   : > { %p394_p11 = pnand %p393_p8, %p676_p9  ;;  %s398_s16 = scalar_lea.vmem %s397_s15, 192 }
  0x43   : > { %v162_v12 = vadd.f32 %v161_v8, %v160_v11  ;;  %v167_v13 = vadd.f32 %v166_v9, %v160_v11  ;;  %v173_v14 = vadd.f32 %v172_v10, %v160_v11  ;;  %p399_p5 = scmp.lt.s32.totalorder %s613_s28, %s397_s15  ;;  %p400_p13 = scmp.lt.s32.totalorder %s398_s16, %s392_s12 }
  0x44   : > { %p395_p0 = pneg %p394_p11 }
  0x45   : > { %v284_v15 = vclamps-f32 %v162_v12, 1.0  ;;  %v285_v16 = vclamps-f32 %v167_v13, 1.0  ;;  %v287_v17 = vclamps-f32 %v173_v14, 1.0  ;;  %p401_p2 = por %p400_p13, %p399_p5 }
  0x47   : > { %165 = vst [vmem:[%s151_s25] sm:$0x3] %v284_v15  ;;  %286 = vst [vmem:[%s151_s25 + $0x2] sm:$0x3] %v285_v16  ;;  %p402_p4 = pnand %p401_p2, %p395_p0 }
  0x48   : > { %288 = vst [vmem:[%s151_s25 + $0x4] sm:$0x3] %v287_v17 }
  0x49   : > { %405 = shalt.err (!%p402_p4)
}
  0x4a   : > { %s406_s17 = scalar_lea.hbm %s618_s5, 96  ;;  %s410_s24 = scalar_lea.hbm %s668_s1, 192 }
  0x4b   : > { %p407_p6 = scmp.ne.s32.totalorder %s618_s5, %s406_s17  ;;  %p411_p12 = scmp.lt.u32.totalorder %s618_s5, %s668_s1 }
  0x4c   : > { %p412_p1 = scmp.lt.u32.totalorder %s410_s24, %s406_s17  ;;  %p414_p8 = scmp.lt.u32.totalorder %s406_s17, %s618_s5 }
  0x4d   : > { %p408_p7 = pnand %p407_p6, %p676_p9 }
  0x4e   : > { %p413_p3 = por %p412_p1, %p411_p12 }
  0x4f   : > { %p409_p10 = pneg %p408_p7 }
  0x50   : > { %p415_p11 = por %p414_p8, %p413_p3 }
  0x52   : > { %p416_p0 = pnand %p415_p11, %p409_p10 }
  0x54   : > { %419 = shalt.err (!%p416_p0)
}
  0x55   : > { %s480_s3 = smov 32   ;;  %s481_s4 = smov 2  }
  0x56   : > { %298 = dma.vmem_to_hbm [thread:$0]  (%p676_p9), %s613_s28, 96, %s618_s5, %s179_s9, %s480_s3, %s480_s3, %s481_s4  }
  0x57 PF: > { %s208_s25 = sand.u32 1, %s454_s6   ;;  %p677_p5 = scmp.ne.s32.totalorder %s673_s21, 0 }
  0x58   : > { %p678_p13 = scmp.ge.s32.totalorder %s474_s11, 2  ;;  %s209_s30 = scalar_lea.sflag [#allocation4], %s208_s25 }
  0x5a   : > { %p305_p2 = pnand %p678_p13, %p677_p5 }
  0x5c   : > { %449 = dma.done.wait (!%p305_p2), %s209_s30, 96  }
  0x5d   : > { %451 = vsyncadd (!%p305_p2), %s209_s30, 4294967200  ;;  %s17_s11 = sadd.s32 1, %s474_s11   ;;  %s679_s6 = smov %s458_s7 }
  0x5e   : > { %p14_p4 = scmp.ge.s32.totalorder %s17_s11, 4   ;;  %s680_s7 = smov %s462_s8 }
  0x5f   : > { %s681_s8 = smov %s548_s20  ;;  %s682_s9 = smov %s470_s10 }
  0x60   : > { %s683_s10 = smov %s685_s14  ;;  %16 = sbr.rel (!%p14_p4) target bundleno = 6 (0x6), region = 71 }
  0x67   :  { %214 = vsyncpa [#allocation3], 1 }
  0x68   :  { %216 = vsyncpa [#allocation3 + $0x1], 1 }
  0x69   :  { %217 = vsyncpa [#allocation4], 1 }
  0x6a   :  { %219 = vsyncpa [#allocation4 + $0x1], 1 }

</bundles_post_ra>
